<compile_context>
chip_gen: v7x
topology: tpu7x:2x2x1
jax: 0.10.0
libtpu: 0.0.40
codegen_flags: <defaults>
</compile_context>

<pallas_src>
import jax
import jax.numpy as jnp
from jax.experimental import pallas as pl
from jax.experimental.pallas import tpu as pltpu


# -----------------------------------------------------------------------------
# Pallas kernel: the entire LSTM stack in one invocation (no grid)
# -----------------------------------------------------------------------------
def _stacked_lstm_kernel(x_ref, w_ref, s0_ref, s1_ref):
    """Lane-group layouts (groups of width H, 4H lanes total):

      state tile s      : [ 1 | c | 0 | h ]
      gate tile (gates) : [ i | f | g | o ]
      kin = concat([prev_tile, state_tile])            (B_pad, 8H)
      fused weight rows (8H, 4H):
        rows [0:E)    = W_ih^T   (layer 0: its input lives in prev[0:E))
        rows [3H:4H)  = W_ih^T   (layers >=1: input = prev layer's h1, which
                                  lives in prev's h group [3H:4H))
        row  [4H]     = b_ih + b_hh   (hit by the constant-1 lane)
        rows [7H:8H)  = W_hh^T   (h0 lives in the state tile's h group)
        all other rows = 0       (so garbage lanes of prev / the c0 lanes of
                                  the state tile contribute nothing)
    """
    L, K, G = w_ref.shape                 # G = 4H, K = 2G = 8H
    H = G // 4
    B_pad = x_ref.shape[0]

    lane = jax.lax.broadcasted_iota(jnp.int32, (B_pad, G), 1)
    g_lanes = (lane >= 2 * H) & (lane < 3 * H)   # tanh gate group
    c_lanes = (lane >= H) & (lane < 2 * H)       # c slot of the state tile
    h_lanes = lane >= 3 * H                      # h slot of the state tile

    prev = x_ref[...]                            # (B_pad, 4H) bf16
    for l in range(L):                           # static unroll (small L)
        s0 = s0_ref[l]                           # (B_pad, 4H) f32  [1|c0|0|h0]
        kin = jnp.concatenate([prev, s0.astype(jnp.bfloat16)], axis=1)
        # gates = x @ W_ih^T + h0 @ W_hh^T + (b_ih + b_hh), f32 accumulation.
        gates = jnp.dot(kin, w_ref[l], preferred_element_type=jnp.float32)

        # Nonlinearities on the full 4H tile: tanh on the g group, sigmoid
        # elsewhere.  act lane groups: [ i | f | g | o ].
        act = jnp.where(g_lanes, jnp.tanh(gates), jax.nn.sigmoid(gates))

        # i*g aligned to the c slot: the +H and +3H rotations place i and g on
        # the f/c lane group (in either order, so the roll direction
        # convention is irrelevant).
        ig = (pltpu.roll(act, shift=H, axis=1)
              * pltpu.roll(act, shift=3 * H, axis=1))
        # f*c0 is already aligned: f and c0 share the second lane group.
        c1_t = act * s0 + ig                                  # c lanes = c1
        # h1 = o * tanh(c1): tanh(c1) sits 2H lanes away from o (symmetric
        # half rotation, direction-free).
        h1_t = act * pltpu.roll(jnp.tanh(c1_t), shift=2 * H, axis=1)  # h lanes = h1

        s1_ref[l] = jnp.where(c_lanes, c1_t,
                              jnp.where(h_lanes, h1_t, 0.0))

        # Next layer's input = this layer's hidden state.  Lanes outside the
        # h group carry garbage but hit all-zero fused-weight rows.
        # TODO(synk): inter-layer nn.Dropout is training-only; eval (identity)
        #             semantics are implemented here.
        prev = h1_t.astype(jnp.bfloat16)


# -----------------------------------------------------------------------------
# One-time weight packing (hoisted out of the forward path)
# -----------------------------------------------------------------------------
def pack_stacked_lstm_params(params):
    """params: list of L dicts with w_ih (4H, E_l), w_hh (4H, H), b_ih, b_hh.

    Returns the fused (L, 8H, 4H) bf16 weight array used by the kernel.
    """
    L = len(params)
    H = params[0]["w_hh"].shape[1]
    E = params[0]["w_ih"].shape[1]
    G = 4 * H
    if E > G:
        # TODO(synk): input_size > 4*hidden_size needs a wider first tile.
        raise ValueError("input_size must be <= 4*hidden_size for this kernel")
    w = jnp.zeros((L, 2 * G, G), jnp.float32)
    for l, p in enumerate(params):
        w_ih_t = p["w_ih"].T.astype(jnp.float32)
        if l == 0:
            w = w.at[l, :E, :].set(w_ih_t)                 # layer-0 input lanes
        else:
            w = w.at[l, 3 * H:G, :].set(w_ih_t)            # prev-layer h1 lanes
        w = w.at[l, G, :].set((p["b_ih"] + p["b_hh"]).astype(jnp.float32))
        w = w.at[l, G + 3 * H:, :].set(p["w_hh"].T.astype(jnp.float32))
    return w.astype(jnp.bfloat16)


# -----------------------------------------------------------------------------
# Forward wrapper
# -----------------------------------------------------------------------------
@jax.jit
def stacked_lstm_forward(w_fused, x, h_0, c_0):
    """(B, E), (L, B, H), (L, B, H) -> (B, H), ((L, B, H), (L, B, H))."""
    L, K, G = w_fused.shape
    H = G // 4
    B, E = x.shape
    B_pad = max(8, -(-B // 8) * 8)       # pad batch to the 8-row sublane width

    x_tile = jnp.zeros((B_pad, G), jnp.bfloat16).at[:B, :E].set(
        x.astype(jnp.bfloat16))
    s0 = jnp.zeros((L, B_pad, G), jnp.float32)
    s0 = s0.at[:, :, 0].set(1.0)                              # bias-selector lane
    s0 = s0.at[:, :B, H:2 * H].set(c_0.astype(jnp.float32))   # c0 (stays f32)
    s0 = s0.at[:, :B, 3 * H:].set(h_0.astype(jnp.float32))    # h0 (MXU uses bf16)

    s1 = pl.pallas_call(
        _stacked_lstm_kernel,
        out_shape=jax.ShapeDtypeStruct((L, B_pad, G), jnp.float32),
    )(x_tile, w_fused, s0)

    h_1 = s1[:, :B, 3 * H:]
    c_1 = s1[:, :B, H:2 * H]
    # Module output = last layer's hidden state (dropout never follows the
    # last layer, so this equals `input` after the PyTorch loop).
    return h_1[-1], (h_1, c_1)


# -----------------------------------------------------------------------------
# Pure-JAX f32 reference (exact PyTorch StackedLSTM eval semantics)
# -----------------------------------------------------------------------------
def _stacked_lstm_ref(params, x, h_0, c_0):
    inp = x.astype(jnp.float32)
    h1s, c1s = [], []
    for l, p in enumerate(params):
        H = p["w_hh"].shape[1]
        gates = (inp @ p["w_ih"].T + p["b_ih"]
                 + h_0[l] @ p["w_hh"].T + p["b_hh"])
        i = jax.nn.sigmoid(gates[:, 0 * H:1 * H])
        f = jax.nn.sigmoid(gates[:, 1 * H:2 * H])
        g = jnp.tanh(gates[:, 2 * H:3 * H])
        o = jax.nn.sigmoid(gates[:, 3 * H:4 * H])
        c1 = f * c_0[l] + i * g
        h1 = o * jnp.tanh(c1)
        h1s.append(h1)
        c1s.append(c1)
        inp = h1
    return inp, (jnp.stack(h1s), jnp.stack(c1s))


# -----------------------------------------------------------------------------
# Deterministic parameter construction (nn.LSTMCell shapes / init range)
# -----------------------------------------------------------------------------
def init_params(key, num_layers, input_size, hidden_size):
    params = []
    scale = 1.0 / jnp.sqrt(hidden_size)
    keys = jax.random.split(key, 4 * num_layers)
    for l in range(num_layers):
        in_size = input_size if l == 0 else hidden_size
        k0, k1, k2, k3 = keys[4 * l:4 * l + 4]
        params.append({
            "w_ih": jax.random.uniform(k0, (4 * hidden_size, in_size),
                                       jnp.float32, -scale, scale),
            "w_hh": jax.random.uniform(k1, (4 * hidden_size, hidden_size),
                                       jnp.float32, -scale, scale),
            "b_ih": jax.random.uniform(k2, (4 * hidden_size,),
                                       jnp.float32, -scale, scale),
            "b_hh": jax.random.uniform(k3, (4 * hidden_size,),
                                       jnp.float32, -scale, scale),
        })
    return params


if __name__ == "__main__":
    # Small config consistent with the module: num_layers=2, input_size=32,
    # hidden_size=32, batch=2 (one time step — StackedLSTM is a cell stack).
    LAYERS, EMB, HID, B = 2, 32, 32, 2

    key = jax.random.PRNGKey(0)
    k_par, k_x, k_h, k_c = jax.random.split(key, 4)

    params = init_params(k_par, LAYERS, EMB, HID)
    x = jax.random.normal(k_x, (B, EMB), jnp.float32)
    h_0 = jax.random.normal(k_h, (LAYERS, B, HID), jnp.float32)
    c_0 = jax.random.normal(k_c, (LAYERS, B, HID), jnp.float32)

    # Pack weights ONCE (outside the forward path).
    w_fused = pack_stacked_lstm_params(params)

    out, (h_1, c_1) = stacked_lstm_forward(w_fused, x, h_0, c_0)
    jax.block_until_ready((out, h_1, c_1))

    assert out.shape == (B, HID)
    assert h_1.shape == (LAYERS, B, HID)
    assert c_1.shape == (LAYERS, B, HID)

    # Compare against the exact f32 reference (loose tolerance: the kernel
    # feeds bf16 operands — including the fused bias row — to the MXU).
    out_ref, (h_ref, c_ref) = _stacked_lstm_ref(params, x, h_0, c_0)
    assert float(jnp.max(jnp.abs(out - out_ref))) < 0.15
    assert float(jnp.max(jnp.abs(h_1 - h_ref))) < 0.15
    assert float(jnp.max(jnp.abs(c_1 - c_ref))) < 0.25

    print("KERNEL_OK")
</pallas_src>

<mosaic_0001>
module attributes {stable_mosaic.version = 11 : i64} {
  func.func @_stacked_lstm_kernel(%arg0: memref<8x128xbf16, #tpu.memory_space<vmem>>, %arg1: memref<2x256x128xbf16, #tpu.memory_space<vmem>>, %arg2: memref<2x8x128xf32, #tpu.memory_space<vmem>>, %arg3: memref<2x8x128xf32, #tpu.memory_space<vmem>>) attributes {dimension_semantics = [], scalar_prefetch = 0 : i64, scratch_operands = 0 : i64, tpu.core_type = #tpu.core_type<tc>} {
    %0 = tpu.iota {dimensions = array<i32: 1>} : vector<8x128xi32>
    %c64_i32 = arith.constant 64 : i32
    %1 = vector.broadcast %c64_i32 : i32 to vector<8x128xi32>
    %2 = arith.cmpi sge, %0, %1 : vector<8x128xi32>
    %c96_i32 = arith.constant 96 : i32
    %3 = vector.broadcast %c96_i32 : i32 to vector<8x128xi32>
    %4 = arith.cmpi slt, %0, %3 : vector<8x128xi32>
    %5 = arith.andi %2, %4 : vector<8x128xi1>
    %c32_i32 = arith.constant 32 : i32
    %6 = vector.broadcast %c32_i32 : i32 to vector<8x128xi32>
    %7 = arith.cmpi sge, %0, %6 : vector<8x128xi32>
    %c64_i32_0 = arith.constant 64 : i32
    %8 = vector.broadcast %c64_i32_0 : i32 to vector<8x128xi32>
    %9 = arith.cmpi slt, %0, %8 : vector<8x128xi32>
    %10 = arith.andi %7, %9 : vector<8x128xi1>
    %c96_i32_1 = arith.constant 96 : i32
    %11 = vector.broadcast %c96_i32_1 : i32 to vector<8x128xi32>
    %12 = arith.cmpi sge, %0, %11 : vector<8x128xi32>
    %c0 = arith.constant 0 : index
    %c0_2 = arith.constant 0 : index
    %13 = vector.load %arg0[%c0, %c0_2] : memref<8x128xbf16, #tpu.memory_space<vmem>>, vector<8x128xbf16>
    %c0_3 = arith.constant 0 : index
    %c0_4 = arith.constant 0 : index
    %c0_5 = arith.constant 0 : index
    %14 = vector.load %arg2[%c0_3, %c0_4, %c0_5] : memref<2x8x128xf32, #tpu.memory_space<vmem>>, vector<1x8x128xf32>
    %15 = vector.shape_cast %14 : vector<1x8x128xf32> to vector<8x128xf32>
    %16 = arith.truncf %15 : vector<8x128xf32> to vector<8x128xbf16>
    %17 = tpu.concatenate %13, %16 in 1 : vector<8x128xbf16>, vector<8x128xbf16> -> vector<8x256xbf16>
    %c0_6 = arith.constant 0 : index
    %c0_7 = arith.constant 0 : index
    %c0_8 = arith.constant 0 : index
    %18 = vector.load %arg1[%c0_6, %c0_7, %c0_8] : memref<2x256x128xbf16, #tpu.memory_space<vmem>>, vector<1x256x128xbf16>
    %19 = vector.shape_cast %18 : vector<1x256x128xbf16> to vector<256x128xbf16>
    %cst = arith.constant dense<0.000000e+00> : vector<8x128xf32>
    %20 = tpu.matmul %17, %19, %cst {dimension_numbers = #tpu.dot_dimension_numbers<[1], [0], [0], [1], [0, 0, 1, 1], [], []>} : vector<8x256xbf16>, vector<256x128xbf16>, vector<8x128xf32> -> vector<8x128xf32>
    %21 = math.tanh %20 : vector<8x128xf32>
    %22 = arith.negf %20 : vector<8x128xf32>
    %23 = math.exp %22 : vector<8x128xf32>
    %cst_9 = arith.constant 1.000000e+00 : f32
    %24 = vector.broadcast %cst_9 : f32 to vector<8x128xf32>
    %25 = arith.addf %24, %23 : vector<8x128xf32>
    %26 = arith.divf %24, %25 : vector<8x128xf32>
    %27 = arith.select %5, %21, %26 : vector<8x128xi1>, vector<8x128xf32>
    %c32_i32_10 = arith.constant 32 : i32
    %28 = tpu.dynamic_rotate %27 by %c32_i32_10 dim 1 : vector<8x128xf32>, i32 -> vector<8x128xf32>
    %c96_i32_11 = arith.constant 96 : i32
    %29 = tpu.dynamic_rotate %27 by %c96_i32_11 dim 1 : vector<8x128xf32>, i32 -> vector<8x128xf32>
    %30 = arith.mulf %28, %29 : vector<8x128xf32>
    %31 = arith.mulf %27, %15 : vector<8x128xf32>
    %32 = arith.addf %31, %30 : vector<8x128xf32>
    %33 = math.tanh %32 : vector<8x128xf32>
    %c64_i32_12 = arith.constant 64 : i32
    %34 = tpu.dynamic_rotate %33 by %c64_i32_12 dim 1 : vector<8x128xf32>, i32 -> vector<8x128xf32>
    %35 = arith.mulf %27, %34 : vector<8x128xf32>
    %cst_13 = arith.constant 0.000000e+00 : f32
    %36 = vector.broadcast %cst_13 : f32 to vector<8x128xf32>
    %37 = arith.select %12, %35, %36 : vector<8x128xi1>, vector<8x128xf32>
    %38 = arith.select %10, %32, %37 : vector<8x128xi1>, vector<8x128xf32>
    %c0_14 = arith.constant 0 : index
    %c0_15 = arith.constant 0 : index
    %c0_16 = arith.constant 0 : index
    %39 = vector.load %arg3[%c0_14, %c0_15, %c0_16] : memref<2x8x128xf32, #tpu.memory_space<vmem>>, vector<1x8x128xf32>
    %40 = vector.shape_cast %39 : vector<1x8x128xf32> to vector<8x128xf32>
    %41 = vector.shape_cast %38 : vector<8x128xf32> to vector<1x8x128xf32>
    tpu.vector_store %arg3[%c0_14, %c0_15, %c0_16], %41 {strides = array<i32>} : memref<2x8x128xf32, #tpu.memory_space<vmem>>, vector<1x8x128xf32>,
    %42 = arith.truncf %35 : vector<8x128xf32> to vector<8x128xbf16>
    %c1 = arith.constant 1 : index
    %c0_17 = arith.constant 0 : index
    %c0_18 = arith.constant 0 : index
    %43 = vector.load %arg2[%c1, %c0_17, %c0_18] : memref<2x8x128xf32, #tpu.memory_space<vmem>>, vector<1x8x128xf32>
    %44 = vector.shape_cast %43 : vector<1x8x128xf32> to vector<8x128xf32>
    %45 = arith.truncf %44 : vector<8x128xf32> to vector<8x128xbf16>
    %46 = tpu.concatenate %42, %45 in 1 : vector<8x128xbf16>, vector<8x128xbf16> -> vector<8x256xbf16>
    %c1_19 = arith.constant 1 : index
    %c0_20 = arith.constant 0 : index
    %c0_21 = arith.constant 0 : index
    %47 = vector.load %arg1[%c1_19, %c0_20, %c0_21] : memref<2x256x128xbf16, #tpu.memory_space<vmem>>, vector<1x256x128xbf16>
    %48 = vector.shape_cast %47 : vector<1x256x128xbf16> to vector<256x128xbf16>
    %cst_22 = arith.constant dense<0.000000e+00> : vector<8x128xf32>
    %49 = tpu.matmul %46, %48, %cst_22 {dimension_numbers = #tpu.dot_dimension_numbers<[1], [0], [0], [1], [0, 0, 1, 1], [], []>} : vector<8x256xbf16>, vector<256x128xbf16>, vector<8x128xf32> -> vector<8x128xf32>
    %50 = math.tanh %49 : vector<8x128xf32>
    %51 = arith.negf %49 : vector<8x128xf32>
    %52 = math.exp %51 : vector<8x128xf32>
    %cst_23 = arith.constant 1.000000e+00 : f32
    %53 = vector.broadcast %cst_23 : f32 to vector<8x128xf32>
    %54 = arith.addf %53, %52 : vector<8x128xf32>
    %55 = arith.divf %53, %54 : vector<8x128xf32>
    %56 = arith.select %5, %50, %55 : vector<8x128xi1>, vector<8x128xf32>
    %c32_i32_24 = arith.constant 32 : i32
    %57 = tpu.dynamic_rotate %56 by %c32_i32_24 dim 1 : vector<8x128xf32>, i32 -> vector<8x128xf32>
    %c96_i32_25 = arith.constant 96 : i32
    %58 = tpu.dynamic_rotate %56 by %c96_i32_25 dim 1 : vector<8x128xf32>, i32 -> vector<8x128xf32>
    %59 = arith.mulf %57, %58 : vector<8x128xf32>
    %60 = arith.mulf %56, %44 : vector<8x128xf32>
    %61 = arith.addf %60, %59 : vector<8x128xf32>
    %62 = math.tanh %61 : vector<8x128xf32>
    %c64_i32_26 = arith.constant 64 : i32
    %63 = tpu.dynamic_rotate %62 by %c64_i32_26 dim 1 : vector<8x128xf32>, i32 -> vector<8x128xf32>
    %64 = arith.mulf %56, %63 : vector<8x128xf32>
    %cst_27 = arith.constant 0.000000e+00 : f32
    %65 = vector.broadcast %cst_27 : f32 to vector<8x128xf32>
    %66 = arith.select %12, %64, %65 : vector<8x128xi1>, vector<8x128xf32>
    %67 = arith.select %10, %61, %66 : vector<8x128xi1>, vector<8x128xf32>
    %c1_28 = arith.constant 1 : index
    %c0_29 = arith.constant 0 : index
    %c0_30 = arith.constant 0 : index
    %68 = vector.load %arg3[%c1_28, %c0_29, %c0_30] : memref<2x8x128xf32, #tpu.memory_space<vmem>>, vector<1x8x128xf32>
    %69 = vector.shape_cast %68 : vector<1x8x128xf32> to vector<8x128xf32>
    %70 = vector.shape_cast %67 : vector<8x128xf32> to vector<1x8x128xf32>
    tpu.vector_store %arg3[%c1_28, %c0_29, %c0_30], %70 {strides = array<i32>} : memref<2x8x128xf32, #tpu.memory_space<vmem>>, vector<1x8x128xf32>,
    return
  }
}

</mosaic_0001>

<bundles_post_ra>
// kernel: stacked_lstm_forward.1
= control target key start
LH: loop header
LB: loop body
LE: loop exit
PB: predicated region body
PF: predicated region fallthrough
CT: control target
= control target key end

     0   :  { %8 = vsyncpa [#allocation3], 0  ;;  %s589_s12 = smov [#allocation2]   ;;  %s681_s0 = inlined_call_operand.vmem [shape: bf16[8,128], index: 0, kind: input, shape index: {}]   ;;  %s682_s1 = inlined_call_operand.hbm [shape: bf16[2,256,128], index: 1, kind: input, shape index: {}]   ;;  %s683_s2 = inlined_call_operand.vmem [shape: f32[2,8,128], index: 2, kind: input, shape index: {}]   ;;  %s684_s3 = inlined_call_operand.vmem [shape: f32[2,8,128], index: 3, kind: output, shape index: {}]  }
   0x1   :  { %s16_s13 = sshll.u32 %s589_s12, 4  ;;  %s565_s16 = scalar_lea.hbm %s682_s1, 4096  ;;  %s17_s13 = int_to_ptr.vmem [resolvable:$true] %s16_s13 }
   0x2   :  { %p566_p0 = scmp.ne.s32.totalorder %s682_s1, %s565_s16  ;;  %p569_p1 = scmp.lt.u32.totalorder %s565_s16, %s682_s1 }
   0x4   :  { %p571_p2 = pnand %p569_p1, %p566_p0 }
   0x6   :  { %574 = shalt.err (!%p571_p2)
}
   0x7   :  { %s575_s21 = scalar_lea.vmem %s17_s13, 4096  ;;  %p580_p4 = scmp.lt.s32.totalorder %s17_s13, %s17_s13 }
   0x8   :  { %p576_p3 = scmp.ne.s32.totalorder %s17_s13, %s575_s21  ;;  %p581_p5 = scmp.lt.s32.totalorder %s575_s21, %s575_s21 }
   0xa   :  { %p582_p6 = por %p581_p5, %p580_p4 }
   0xc   :  { %p583_p7 = pnand %p582_p6, %p576_p3 }
   0xe   :  { %586 = shalt.err (!%p583_p7)
}
   0xf   :  { %s590_s22 = smov 64   ;;  %s591_s23 = smov 4  }
  0x10   :  { %22 = dma.hbm_to_vmem [thread:$0]  %s682_s1, 4096, %s17_s13, [#allocation3], %s590_s22, %s590_s22, %s591_s23  }
  0x11   :  { %587 = dma.done.wait [#allocation3], 4096  }
  0x12   :  { %588 = vsyncadd [#allocation3], 4294963200  ;;  %v517_v0 = vld [vmem:[#allocation2 + $0x40] sm:$0xff]   ;;  %v519_v2 = vld [vmem:[#allocation2 + $0x48] sm:$0xff]   ;;  %v29_v26 = vlaneseq  ;;  %s593_s29 = smov 96  }
  0x13   :  { %v518_v1 = vld [vmem:[#allocation2] sm:$0xff]   ;;  %468 = vmatprep.subr.bf16.mxu0 %v517_v0  ;;  %v520_v3 = vld [vmem:[#allocation2 + $0x8] sm:$0xff]   ;;  %v521_v4 = vld [vmem:[#allocation2 + $0x50] sm:$0xff]  }
  0x14   :  { %469 = vmatpush3.bf16.msra.mxu0 %v518_v1  ;;  %v522_v5 = vld [vmem:[#allocation2 + $0x10] sm:$0xff]   ;;  %v523_v6 = vld [vmem:[#allocation2 + $0x58] sm:$0xff]   ;;  %v525_v8 = vld [vmem:[#allocation2 + $0x60] sm:$0xff]   ;;  %v638_v28 = vand.u32 127, %v29_v26 }
  0x15   :  { %470 = vmatprep.subr.bf16.mxu0 %v519_v2  ;;  %v524_v7 = vld [vmem:[#allocation2 + $0x18] sm:$0xff]   ;;  %v526_v9 = vld [vmem:[#allocation2 + $0x20] sm:$0xff]   ;;  %v527_v10 = vld [vmem:[#allocation2 + $0x68] sm:$0xff]  }
  0x16   :  { %v631_v11 = vld [vmem:[%s683_s2] sm:$0xff]  ;;  %v528_v12 = vld [vmem:[#allocation2 + $0x28] sm:$0xff]   ;;  %v529_v14 = vld [vmem:[#allocation2 + $0x70] sm:$0xff]   ;;  %vm31_vm0 = vcmp.ge.s32.totalorder %v638_v28, 64  ;;  %vm32_vm1 = vcmp.lt.s32.totalorder %v638_v28, 96  ;;  %vm34_vm3 = vcmp.ge.s32.totalorder %v638_v28, 32 }
  0x17   :  { %v40_v13 = vpack.c.bf16 %v631_v11, %v631_v11  ;;  %v530_v15 = vld [vmem:[#allocation2 + $0x30] sm:$0xff]   ;;  %v531_v16 = vld [vmem:[#allocation2 + $0x78] sm:$0xff]   ;;  %v38_v18 = vld [vmem:[%s681_s0] sm:$0xf]  ;;  %s592_s0 = smov 32   ;;  %vm35_vm4 = vcmp.lt.s32.totalorder %v638_v28, 64 }
  0x18   :  { %471 = vmatpush3.bf16.msra.mxu0 %v520_v3  ;;  %v532_v17 = vld [vmem:[#allocation2 + $0x38] sm:$0xff]   ;;  %vm642_vm2 = vmand %vm31_vm0, %vm32_vm1  ;;  %v533_v33 = vld [vmem:[#allocation2 + $0xc0] sm:$0xff]   ;;  %vm37_vm5 = vcmp.ge.s32.totalorder %v638_v28, 96 }
  0x19   :  { %472 = vmatprep.subr.bf16.mxu0 %v521_v4  ;;  %201 = vmatprep.mubr.bf16.mxu0 %v40_v13  ;;  %v534_v34 = vld [vmem:[#allocation2 + $0x80] sm:$0xff]   ;;  %v535_v35 = vld [vmem:[#allocation2 + $0xc8] sm:$0xff]   ;;  %v537_v37 = vld [vmem:[#allocation2 + $0xd0] sm:$0xff]  }
  0x1a   :  { %490 = vmatprep.subr.bf16.mxu1 %v533_v33  ;;  %v536_v36 = vld [vmem:[#allocation2 + $0x88] sm:$0xff]   ;;  %v538_v38 = vld [vmem:[#allocation2 + $0x90] sm:$0xff]   ;;  %v539_v39 = vld [vmem:[#allocation2 + $0xd8] sm:$0xff]  }
  0x1b   :  { %491 = vmatpush3.bf16.msra.mxu1 %v534_v34  ;;  %v540_v40 = vld [vmem:[#allocation2 + $0x98] sm:$0xff]   ;;  %v541_v41 = vld [vmem:[#allocation2 + $0xe0] sm:$0xff]   ;;  %v543_v43 = vld [vmem:[#allocation2 + $0xe8] sm:$0xff]  }
  0x1c   :  { %473 = vmatpush3.bf16.msra.mxu0 %v522_v5  ;;  %492 = vmatprep.subr.bf16.mxu1 %v535_v35  ;;  %v542_v42 = vld [vmem:[#allocation2 + $0xa0] sm:$0xff]   ;;  %v544_v44 = vld [vmem:[#allocation2 + $0xa8] sm:$0xff]   ;;  %v545_v45 = vld [vmem:[#allocation2 + $0xf0] sm:$0xff]  }
  0x1d   :  { %474 = vmatprep.subr.bf16.mxu0 %v523_v6  ;;  %v546_v46 = vld [vmem:[#allocation2 + $0xb0] sm:$0xff]   ;;  %v547_v51 = vld [vmem:[#allocation2 + $0xf8] sm:$0xff]   ;;  %v449_v54 = vld [vmem:[%s683_s2 + $0x8] sm:$0xff] }
  0x1e   :  { %v548_v52 = vld [vmem:[#allocation2 + $0xb8] sm:$0xff]   ;;  %v234_v55 = vpack.c.bf16 %v449_v54, %v449_v54  ;;  %vm658_vm6 = vmand %vm34_vm3, %vm35_vm4 }
  0x1f   :  { %493 = vmatpush3.bf16.msra.mxu1 %v536_v36 }
  0x20   :  { %475 = vmatpush3.bf16.msra.mxu0 %v524_v7  ;;  %494 = vmatprep.subr.bf16.mxu1 %v537_v37 }
  0x21   :  { %476 = vmatprep.subr.bf16.mxu0 %v525_v8  ;;  %396 = vmatprep.mubr.bf16.mxu1 %v234_v55 }
  0x23   :  { %495 = vmatpush3.bf16.msra.mxu1 %v538_v38 }
  0x24   :  { %477 = vmatpush3.bf16.msra.mxu0 %v526_v9  ;;  %496 = vmatprep.subr.bf16.mxu1 %v539_v39 }
  0x25   :  { %478 = vmatprep.subr.bf16.mxu0 %v527_v10 }
  0x27   :  { %497 = vmatpush3.bf16.msra.mxu1 %v540_v40 }
  0x28   :  { %479 = vmatpush3.bf16.msra.mxu0 %v528_v12  ;;  %498 = vmatprep.subr.bf16.mxu1 %v541_v41 }
  0x29   :  { %480 = vmatprep.subr.bf16.mxu0 %v529_v14 }
  0x2b   :  { %499 = vmatpush3.bf16.msra.mxu1 %v542_v42 }
  0x2c   :  { %481 = vmatpush3.bf16.msra.mxu0 %v530_v15  ;;  %500 = vmatprep.subr.bf16.mxu1 %v543_v43 }
  0x2d   :  { %482 = vmatprep.subr.bf16.mxu0 %v531_v16 }
  0x2f   :  { %501 = vmatpush3.bf16.msra.mxu1 %v544_v44 }
  0x30   :  { %483 = vmatpush3.bf16.msra.mxu0 %v532_v17  ;;  %502 = vmatprep.subr.bf16.mxu1 %v545_v45 }
  0x33   :  { %202 = vmatmul.mubr.bf16.vlgmr.msra.gmra.mrb[0].mxu0 %v38_v18  ;;  %503 = vmatpush3.bf16.msra.mxu1 %v546_v46 }
  0x34   :  { %504 = vmatprep.subr.bf16.mxu1 %v547_v51 }
  0x37   :  { %505 = vmatpush3.bf16.msra.mxu1 %v548_v52 }
 0x106   :  { %v484_v19 = vpop.f32.mrb[0].mxu0 }
 0x107   :  { %v485_v20 = vpop.f32.mrb[1].mxu0 }
 0x108   :  { %v486_v21 = vadd.f32 %v485_v20, %v484_v19  ;;  %v487_v22 = vpop.f32.mrb[2].mxu0 }
 0x109   :  { %v488_v23 = vpop.f32.mrb[3].mxu0 }
 0x10a   :  { %v448_v24 = vmul.f32 -1.442695, %v486_v21 }
 0x10c   :  { %549 = vpow2.f32 %v448_v24 }
 0x10d   :  { %551 = vtanh.f32 %v486_v21 }
 0x116   :  { %v550_v25 = vpop.eup %549 }
 0x117   :  { %v213_v27 = vadd.f32 1.0, %v550_v25  ;;  %v552_v30 = vpop.eup %551 }
 0x119   :  { %553 = vrcp.f32 %v213_v27 }
 0x123   :  { %v554_v31 = vpop.eup %553 }
 0x124   :  { %v216_v32 = vsel %vm642_vm2, %v552_v30, %v554_v31 }
 0x125   :  { %217 = vrot.lane.b32.xlu0 %v216_v32, %s592_s0  ;;  %v222_v50 = vmul.f32 %v216_v32, %v631_v11 }
 0x129   :  { %219 = vrot.lane.b32.xlu0 %v216_v32, %s593_s29 }
 0x197   :  { %v218_v47 = vpop.permute.xlu0 %217 }
 0x19b   :  { %v220_v48 = vpop.permute.xlu0 %219 }
 0x19c   :  { %v221_v49 = vmul.f32 %v220_v48, %v218_v47 }
 0x19e   :  { %v223_v53 = vadd.f32 %v222_v50, %v221_v49 }
 0x1a0   :  { %555 = vtanh.f32 %v223_v53 }
 0x1aa   :  { %v556_v56 = vpop.eup %555 }
 0x1ab   :  { %225 = vrot.lane.b32.xlu1 %v556_v56, %s590_s22 }
 0x21d   :  { %v226_v57 = vpop.permute.xlu1 %225 }
 0x21e   :  { %v227_v59 = vmul.f32 %v226_v57, %v216_v32 }
 0x220   :  { %v228_v60 = vsel %vm37_vm5, %v227_v59, 0.0  ;;  %v231_v61 = vpack.c.bf16 %v227_v59, %v227_v59 }
 0x221   :  { %v229_v62 = vsel %vm658_vm6, %v223_v53, %v228_v60 }
 0x222   :  { %230 = vst [vmem:[%s684_s3] sm:$0xff] %v229_v62  ;;  %397 = vmatmul.mubr.bf16.vlgmr.msra.gmra.mrb[0].mxu1 %v231_v61 }
 0x2f5   :  { %v506_v63 = vpop.f32.mrb[0].mxu1 }
 0x2f6   :  { %v507_v0 = vpop.f32.mrb[1].mxu1 }
 0x2f7   :  { %v508_v1 = vadd.f32 %v507_v0, %v506_v63  ;;  %v509_v2 = vpop.f32.mrb[2].mxu1 }
 0x2f8   :  { %v510_v3 = vpop.f32.mrb[3].mxu1 }
 0x2f9   :  { %v466_v4 = vmul.f32 -1.442695, %v508_v1 }
 0x2fb   :  { %557 = vpow2.f32 %v466_v4 }
 0x2fc   :  { %559 = vtanh.f32 %v508_v1 }
 0x305   :  { %v558_v5 = vpop.eup %557 }
 0x306   :  { %v408_v6 = vadd.f32 1.0, %v558_v5  ;;  %v560_v7 = vpop.eup %559 }
 0x308   :  { %561 = vrcp.f32 %v408_v6 }
 0x312   :  { %v562_v8 = vpop.eup %561 }
 0x313   :  { %v411_v9 = vsel %vm642_vm2, %v560_v7, %v562_v8 }
 0x314   :  { %414 = vrot.lane.b32.xlu0 %v411_v9, %s593_s29  ;;  %412 = vrot.lane.b32.xlu1 %v411_v9, %s592_s0  ;;  %v417_v13 = vmul.f32 %v449_v54, %v411_v9 }
 0x386   :  { %v415_v10 = vpop.permute.xlu0 %414  ;;  %v413_v11 = vpop.permute.xlu1 %412 }
 0x387   :  { %v416_v12 = vmul.f32 %v415_v10, %v413_v11 }
 0x389   :  { %v418_v14 = vadd.f32 %v417_v13, %v416_v12 }
 0x38b   :  { %563 = vtanh.f32 %v418_v14 }
 0x395   :  { %v564_v15 = vpop.eup %563 }
 0x396   :  { %420 = vrot.lane.b32.xlu1 %v564_v15, %s590_s22 }
 0x408   :  { %v421_v16 = vpop.permute.xlu1 %420 }
 0x409   :  { %v422_v17 = vmul.f32 %v421_v16, %v411_v9 }
 0x40b   :  { %v423_v18 = vsel %vm37_vm5, %v422_v17, 0.0 }
 0x40c   :  { %v424_v19 = vsel %vm658_vm6, %v418_v14, %v423_v18 }
 0x40d   :  { %467 = vst [vmem:[%s684_s3 + $0x8] sm:$0xff] %v424_v19 }
 0x40e   :  { %431 = vsyncpa [#allocation3], 1 }

</bundles_post_ra>
